<compile_context>
chip_gen: v6e
topology: v6e:2x2x1
jax: 0.10.0
libtpu: 0.0.40
codegen_flags: <defaults>
</compile_context>

<pallas_src>
import numpy as np
import jax
import jax.numpy as jnp
from jax import lax
from jax.experimental import pallas as pl
from jax.experimental.pallas import tpu as pltpu


def merge_block_kernel(p_ref, w_ref, b_ref, g_ref, beta_ref, o_ref):
    # p_ref:    (TN, 9*Cin)  bf16   im2col patches for TN output tokens
    # w_ref:    (9*Cin, Cout) bf16  im2col conv weight
    # b_ref/g_ref/beta_ref: (1, Cout) f32
    # o_ref:    (TN, Cout)   f32
    y = jnp.dot(p_ref[...], w_ref[...],
                preferred_element_type=jnp.float32)          # MXU, bf16 in / f32 acc
    y = y + b_ref[...]

    # LayerNorm over the channel axis (f32), fused on the accumulator.
    mu = jnp.mean(y, axis=-1, keepdims=True)
    var = jnp.mean(jnp.square(y - mu), axis=-1, keepdims=True)
    y = (y - mu) * lax.rsqrt(var + 1e-5)
    y = y * g_ref[...] + beta_ref[...]

    o_ref[...] = y.astype(o_ref.dtype)


def merge_block_pallas(x, H, W, params, *, token_tile=256):
    B, N, Cin = x.shape
    assert N == H * W
    w = params["w"]                       # (3, 3, Cin, Cout)  (HWIO)
    Cout = w.shape[-1]
    Hout, Wout = (H + 1) // 2, (W + 1) // 2
    Nout = Hout * Wout

    # ---- im2col: (B, Nout, 9*Cin), layout-only, no FLOPs ----
    xs = x.reshape(B, H, W, Cin)
    xp = jnp.pad(xs, ((0, 0), (1, 1), (1, 1), (0, 0)))
    cols = [xp[:, kh:kh + 2 * Hout:2, kw:kw + 2 * Wout:2, :]
            for kh in range(3) for kw in range(3)]
    patches = jnp.concatenate(cols, axis=-1)                  # (B, Hout, Wout, 9*Cin)
    patches = patches.reshape(B * Nout, 9 * Cin).astype(jnp.bfloat16)

    w_mat = w.reshape(9 * Cin, Cout).astype(jnp.bfloat16)     # (kh*3+kw)*Cin + ci
    b = params["b"].reshape(1, Cout).astype(jnp.float32)
    gamma = params["gamma"].reshape(1, Cout).astype(jnp.float32)
    beta = params["beta"].reshape(1, Cout).astype(jnp.float32)

    M = B * Nout
    TN = M if M <= token_tile else token_tile                 # full-dim block always legal
    grid = (pl.cdiv(M, TN),)

    out = pl.pallas_call(
        merge_block_kernel,
        out_shape=jax.ShapeDtypeStruct((M, Cout), jnp.float32),
        grid=grid,
        in_specs=[
            pl.BlockSpec((TN, 9 * Cin), lambda t: (t, 0)),
            pl.BlockSpec((9 * Cin, Cout), lambda t: (0, 0)),
            pl.BlockSpec((1, Cout), lambda t: (0, 0)),
            pl.BlockSpec((1, Cout), lambda t: (0, 0)),
            pl.BlockSpec((1, Cout), lambda t: (0, 0)),
        ],
        out_specs=pl.BlockSpec((TN, Cout), lambda t: (t, 0)),
        compiler_params=pltpu.CompilerParams(
            dimension_semantics=("parallel",)),
    )(patches, w_mat, b, gamma, beta)

    return out.reshape(B, Nout, Cout)


def merge_block_reference(x, H, W, params):
    """Pure-JAX reference mirroring the PyTorch module (bf16 conv inputs with
    f32 accumulation, matching the kernel's MXU numerics)."""
    B, N, Cin = x.shape
    Cout = params["w"].shape[-1]
    xi = x.reshape(B, H, W, Cin).astype(jnp.bfloat16)
    w = params["w"].astype(jnp.bfloat16)
    y = lax.conv_general_dilated(
        xi, w, window_strides=(2, 2), padding=((1, 1), (1, 1)),
        dimension_numbers=("NHWC", "HWIO", "NHWC"),
        preferred_element_type=jnp.float32)
    y = y + params["b"]
    y = y.reshape(B, -1, Cout)
    mu = y.mean(-1, keepdims=True)
    var = ((y - mu) ** 2).mean(-1, keepdims=True)
    y = (y - mu) / jnp.sqrt(var + 1e-5)
    return y * params["gamma"] + params["beta"]


if __name__ == "__main__":
    key = jax.random.PRNGKey(0)
    B, H, W = 2, 16, 16
    Cin, Cout = 32, 64
    N = H * W

    ks = jax.random.split(key, 5)
    params = dict(
        # conv weight in HWIO layout: w[kh, kw, ci, co] == torch_weight[co, ci, kh, kw]
        w=jax.random.normal(ks[0], (3, 3, Cin, Cout), jnp.float32) * 0.1,
        b=jax.random.normal(ks[1], (Cout,), jnp.float32) * 0.1,
        gamma=1.0 + jax.random.normal(ks[2], (Cout,), jnp.float32) * 0.1,
        beta=jax.random.normal(ks[3], (Cout,), jnp.float32) * 0.1,
    )
    x = jax.random.normal(ks[4], (B, N, Cin), jnp.float32)

    # token_tile=64 so the small demo still exercises a multi-step parallel grid.
    out = jax.block_until_ready(merge_block_pallas(x, H, W, params, token_tile=64))
    ref = merge_block_reference(x, H, W, params)
    np.testing.assert_allclose(np.asarray(out), np.asarray(ref), atol=5e-3, rtol=5e-3)
    print("KERNEL_OK")
</pallas_src>

<mosaic_0001>
module attributes {stable_mosaic.version = 11 : i64} {
  func.func @merge_block_kernel(%arg0: i32, %arg1: memref<64x288xbf16, #tpu.memory_space<vmem>>, %arg2: memref<288x64xbf16, #tpu.memory_space<vmem>>, %arg3: memref<1x64xf32, #tpu.memory_space<vmem>>, %arg4: memref<1x64xf32, #tpu.memory_space<vmem>>, %arg5: memref<1x64xf32, #tpu.memory_space<vmem>>, %arg6: memref<64x64xf32, #tpu.memory_space<vmem>>) attributes {dimension_semantics = [#tpu.dimension_semantics<parallel>], iteration_bounds = array<i64: 2>, scalar_prefetch = 0 : i64, scratch_operands = 0 : i64, tpu.core_type = #tpu.core_type<tc>, window_params = [{transform_indices = @transform_0, window_bounds = array<i64: 64, 288>}, {pipeline_mode = #tpu.pipeline_mode<synchronous>, transform_indices = @transform_1, window_bounds = array<i64: 288, 64>}, {pipeline_mode = #tpu.pipeline_mode<synchronous>, transform_indices = @transform_2, window_bounds = array<i64: 1, 64>}, {pipeline_mode = #tpu.pipeline_mode<synchronous>, transform_indices = @transform_3, window_bounds = array<i64: 1, 64>}, {pipeline_mode = #tpu.pipeline_mode<synchronous>, transform_indices = @transform_4, window_bounds = array<i64: 1, 64>}, {transform_indices = @transform_5, window_bounds = array<i64: 64, 64>}]} {
    %c0 = arith.constant 0 : index
    %c0_0 = arith.constant 0 : index
    %0 = vector.load %arg1[%c0, %c0_0] : memref<64x288xbf16, #tpu.memory_space<vmem>>, vector<64x288xbf16>
    %c0_1 = arith.constant 0 : index
    %c0_2 = arith.constant 0 : index
    %1 = vector.load %arg2[%c0_1, %c0_2] : memref<288x64xbf16, #tpu.memory_space<vmem>>, vector<288x64xbf16>
    %cst = arith.constant dense<0.000000e+00> : vector<64x64xf32>
    %2 = tpu.matmul %0, %1, %cst {dimension_numbers = #tpu.dot_dimension_numbers<[1], [0], [0], [1], [0, 0, 1, 1], [], []>} : vector<64x288xbf16>, vector<288x64xbf16>, vector<64x64xf32> -> vector<64x64xf32>
    %c0_3 = arith.constant 0 : index
    %c0_4 = arith.constant 0 : index
    %3 = vector.load %arg3[%c0_3, %c0_4] : memref<1x64xf32, #tpu.memory_space<vmem>>, vector<1x64xf32>
    %4 = vector.broadcast %3 : vector<1x64xf32> to vector<64x64xf32>
    %5 = arith.addf %2, %4 : vector<64x64xf32>
    %cst_5 = arith.constant dense<0.000000e+00> : vector<64xf32>
    %6 = vector.multi_reduction <add>, %5, %cst_5 [1] : vector<64x64xf32> to vector<64xf32>
    %7 = vector.shape_cast %6 : vector<64xf32> to vector<64x1xf32>
    %cst_6 = arith.constant 6.400000e+01 : f32
    %8 = vector.broadcast %cst_6 : f32 to vector<64x1xf32>
    %9 = arith.divf %7, %8 : vector<64x1xf32>
    %10 = vector.broadcast %9 : vector<64x1xf32> to vector<64x64xf32>
    %11 = arith.subf %5, %10 : vector<64x64xf32>
    %12 = arith.mulf %11, %11 : vector<64x64xf32>
    %cst_7 = arith.constant dense<0.000000e+00> : vector<64xf32>
    %13 = vector.multi_reduction <add>, %12, %cst_7 [1] : vector<64x64xf32> to vector<64xf32>
    %14 = vector.shape_cast %13 : vector<64xf32> to vector<64x1xf32>
    %cst_8 = arith.constant 6.400000e+01 : f32
    %15 = vector.broadcast %cst_8 : f32 to vector<64x1xf32>
    %16 = arith.divf %14, %15 : vector<64x1xf32>
    %17 = vector.broadcast %9 : vector<64x1xf32> to vector<64x64xf32>
    %18 = arith.subf %5, %17 : vector<64x64xf32>
    %cst_9 = arith.constant 9.99999974E-6 : f32
    %19 = vector.broadcast %cst_9 : f32 to vector<64x1xf32>
    %20 = arith.addf %16, %19 : vector<64x1xf32>
    %21 = math.rsqrt %20 : vector<64x1xf32>
    %22 = vector.broadcast %21 : vector<64x1xf32> to vector<64x64xf32>
    %23 = arith.mulf %18, %22 : vector<64x64xf32>
    %c0_10 = arith.constant 0 : index
    %c0_11 = arith.constant 0 : index
    %24 = vector.load %arg4[%c0_10, %c0_11] : memref<1x64xf32, #tpu.memory_space<vmem>>, vector<1x64xf32>
    %25 = vector.broadcast %24 : vector<1x64xf32> to vector<64x64xf32>
    %26 = arith.mulf %23, %25 : vector<64x64xf32>
    %c0_12 = arith.constant 0 : index
    %c0_13 = arith.constant 0 : index
    %27 = vector.load %arg5[%c0_12, %c0_13] : memref<1x64xf32, #tpu.memory_space<vmem>>, vector<1x64xf32>
    %28 = vector.broadcast %27 : vector<1x64xf32> to vector<64x64xf32>
    %29 = arith.addf %26, %28 : vector<64x64xf32>
    %c0_14 = arith.constant 0 : index
    %c0_15 = arith.constant 0 : index
    %30 = vector.load %arg6[%c0_14, %c0_15] : memref<64x64xf32, #tpu.memory_space<vmem>>, vector<64x64xf32>
    tpu.vector_store %arg6[%c0_14, %c0_15], %29 {strides = array<i32>} : memref<64x64xf32, #tpu.memory_space<vmem>>, vector<64x64xf32>,
    return
  }
  func.func @transform_0(%arg0: i32) -> (i32, i32) {
    %c0_i32 = arith.constant 0 : i32
    %c0_i32_0 = arith.constant 0 : i32
    return %arg0, %c0_i32 : i32, i32
  }
  func.func @transform_1(%arg0: i32) -> (i32, i32) {
    %c0_i32 = arith.constant 0 : i32
    %c0_i32_0 = arith.constant 0 : i32
    %c0_i32_1 = arith.constant 0 : i32
    return %c0_i32, %c0_i32_0 : i32, i32
  }
  func.func @transform_2(%arg0: i32) -> (i32, i32) {
    %c0_i32 = arith.constant 0 : i32
    %c0_i32_0 = arith.constant 0 : i32
    %c0_i32_1 = arith.constant 0 : i32
    return %c0_i32, %c0_i32_0 : i32, i32
  }
  func.func @transform_3(%arg0: i32) -> (i32, i32) {
    %c0_i32 = arith.constant 0 : i32
    %c0_i32_0 = arith.constant 0 : i32
    %c0_i32_1 = arith.constant 0 : i32
    return %c0_i32, %c0_i32_0 : i32, i32
  }
  func.func @transform_4(%arg0: i32) -> (i32, i32) {
    %c0_i32 = arith.constant 0 : i32
    %c0_i32_0 = arith.constant 0 : i32
    %c0_i32_1 = arith.constant 0 : i32
    return %c0_i32, %c0_i32_0 : i32, i32
  }
  func.func @transform_5(%arg0: i32) -> (i32, i32) {
    %c0_i32 = arith.constant 0 : i32
    %c0_i32_0 = arith.constant 0 : i32
    return %arg0, %c0_i32 : i32, i32
  }
}

</mosaic_0001>

<bundles_post_ra>
// kernel: tpu_custom_call.1
= control target key start
LH: loop header
LB: loop body
LE: loop exit
PB: predicated region body
PF: predicated region fallthrough
CT: control target
= control target key end

     0   :  { %s1021_s18 = smov 0   ;;  %s1197_s0 = inlined_call_operand.vmem [shape: bf16[128,288], index: 0, kind: input, shape index: {}]   ;;  %s1198_s1 = inlined_call_operand.vmem [shape: bf16[288,64], index: 1, kind: input, shape index: {}]   ;;  %s1199_s2 = inlined_call_operand.vmem [shape: f32[1,64], index: 2, kind: input, shape index: {}]   ;;  %s1200_s3 = inlined_call_operand.vmem [shape: f32[1,64], index: 3, kind: input, shape index: {}]   ;;  %s1201_s4 = inlined_call_operand.vmem [shape: f32[1,64], index: 4, kind: input, shape index: {}]   ;;  %s1202_s5 = inlined_call_operand.vmem [shape: f32[128,64], index: 5, kind: output, shape index: {}]  }
   0x1 LB: > { %s802_s19 = sadd.s32 4294967295, %s989_s18   ;;  %p806_p0 = scmp.ge.s32.totalorder %s989_s18, 1  ;;  %s989_s18 = sphi %s1021_s18, %s15_s18  }
   0x2   : > { %p189_p1 = scmp.lt.s32.totalorder %s989_s18, 3 }
   0x4   : > { %p190_p2 = pnand %p806_p0, %p189_p1 }
   0x5   : > { %s807_s22 = sshll.u32 (!%p190_p2), %s802_s19, 3 }
   0x6   : > { %193 = sbr.rel (%p190_p2) target bundleno = 578 (0x242), region = 40  ;;  %p219_p3 = scmp.lt.s32.totalorder (!%p190_p2), %s807_s22, 15 }
   0xb   : > { %v933_v0 = vld [vmem:[%s1198_s1 + $0x78] sm:$0xff]   ;;  %v935_v2 = vld [vmem:[%s1198_s1 + $0x70] sm:$0xff]   ;;  %v937_v4 = vld [vmem:[%s1198_s1 + $0x68] sm:$0xff]   ;;  %s1204_s22 = smov (!%p219_p3, %s807_s22), 15  ;;  %vm459_vm0 = vcmask 261120   ;;  %vm602_vm1 = vcmask 523264  }
   0xc   : > { %v934_v1 = vld [vmem:[%s1198_s1 + $0x38] sm:$0xff]   ;;  %850 = vmatprep.subr.bf16.mxu0 %v933_v0  ;;  %908 = vmatprep.subr.bf16.mxu1 %v933_v0  ;;  %v936_v3 = vld [vmem:[%s1198_s1 + $0x30] sm:$0xff]   ;;  %v938_v5 = vld [vmem:[%s1198_s1 + $0x28] sm:$0xff]   ;;  %s924_s10 = smul.u32 12, %s1204_s22 }
   0xd   : > { %851 = vmatpush3.bf16.msra.mxu0 %v934_v1  ;;  %916 = vmatpush3.bf16.msra.mxu1 %v934_v1  ;;  %v939_v6 = vld [vmem:[%s1198_s1 + $0x60] sm:$0xff]   ;;  %v941_v8 = vld [vmem:[%s1198_s1 + $0x58] sm:$0xff]   ;;  %v943_v10 = vld [vmem:[%s1198_s1 + $0x50] sm:$0xff]  }
   0xe   : > { %852 = vmatprep.subr.bf16.mxu0 %v935_v2  ;;  %909 = vmatprep.subr.bf16.mxu1 %v935_v2  ;;  %v940_v7 = vld [vmem:[%s1198_s1 + $0x20] sm:$0xff]   ;;  %s1062_s17 = scalar_lea.vmem %s1197_s0, %s924_s10  ;;  %v942_v9 = vld [vmem:[%s1198_s1 + $0x18] sm:$0xff]   ;;  %v944_v13 = vld [vmem:[%s1198_s1 + $0x10] sm:$0xff]  }
   0xf   : > { %v951_v11 = vld [vmem:[%s1062_s17 + $0x4] ss:$12 sps:$4 sm:$0xff]   ;;  %v954_v12 = vld [vmem:[%s1062_s17 + $0x4c] ss:$12 sps:$4 sm:$0xff]   ;;  %v952_v20 = vld [vmem:[%s1062_s17 + $0x48] ss:$12 sps:$4 sm:$0xff]  }
  0x10   : > { %v945_v14 = vld [vmem:[%s1198_s1 + $0x48] sm:$0xff]   ;;  %504 = vmatprep.mubr.bf16.mxu0 %v951_v11  ;;  %528 = vmatprep.mubr.bf16.mxu1 %v954_v12  ;;  %v947_v16 = vld [vmem:[%s1198_s1 + $0x40] sm:$0xff]   ;;  %v965_v28 = vld [vmem:[%s1062_s17 + $0x30] ss:$12 sps:$4 sm:$0xff]  }
  0x11   : > { %853 = vmatpush3.bf16.msra.mxu0 %v936_v3  ;;  %917 = vmatpush3.bf16.msra.mxu1 %v936_v3  ;;  %v946_v15 = vld [vmem:[%s1198_s1 + $0x8] sm:$0xff]   ;;  %v948_v17 = vld [vmem:[%s1198_s1] sm:$0xff]   ;;  %v966_v29 = vld [vmem:[%s1062_s17 + $0x50] ss:$12 sps:$4 sm:$0xff]  }
  0x12   : > { %854 = vmatprep.subr.bf16.mxu0 %v937_v4  ;;  %910 = vmatprep.subr.bf16.mxu1 %v937_v4  ;;  %v955_v18 = vld [vmem:[%s1198_s1 + $0x88] sm:$0xff]   ;;  %v956_v22 = vld [vmem:[%s1198_s1 + $0x80] sm:$0xff]  }
  0x13   : > { %v949_v19 = vld [vmem:[%s1062_s17] ss:$12 sps:$4 sm:$0xff]   ;;  %v957_v21 = vld [vmem:[%s1062_s17 + $0x1c] ss:$12 sps:$4 sm:$0xff]   ;;  %v960_v24 = vld [vmem:[%s1062_s17 + $0x18] ss:$12 sps:$4 sm:$0xff]  }
  0x14   : > { %v959_v23 = vld [vmem:[%s1062_s17 + $0x8] ss:$12 sps:$4 sm:$0xff]   ;;  %v961_v25 = vld [vmem:[%s1062_s17 + $0x20] ss:$12 sps:$4 sm:$0xff]   ;;  %v964_v27 = vld [vmem:[%s1062_s17 + $0x38] ss:$12 sps:$4 sm:$0xff]  }
  0x15   : > { %855 = vmatpush3.bf16.msra.mxu0 %v938_v5  ;;  %918 = vmatpush3.bf16.msra.mxu1 %v938_v5  ;;  %v962_v26 = vld [vmem:[%s1062_s17 + $0x34] ss:$12 sps:$4 sm:$0xff]   ;;  %s810_s17 = sshll.u32 %s1204_s22, 3 }
  0x16   : > { %856 = vmatprep.subr.bf16.mxu0 %v939_v6  ;;  %911 = vmatprep.subr.bf16.mxu1 %v939_v6  ;;  %v811_v39 = vld [vmem:[%s1199_s2] ss:$0 sm:$0xff]  ;;  %s1169_s24 = scalar_lea.vmem %s1202_s5, %s810_s17 }
  0x19   : > { %857 = vmatpush3.bf16.msra.mxu0 %v940_v7  ;;  %919 = vmatpush3.bf16.msra.mxu1 %v940_v7 }
  0x1a   : > { %858 = vmatprep.subr.bf16.mxu0 %v941_v8  ;;  %912 = vmatprep.subr.bf16.mxu1 %v941_v8 }
  0x1d   : > { %859 = vmatpush3.bf16.msra.mxu0 %v942_v9  ;;  %920 = vmatpush3.bf16.msra.mxu1 %v942_v9 }
  0x1e   : > { %860 = vmatprep.subr.bf16.mxu0 %v943_v10  ;;  %913 = vmatprep.subr.bf16.mxu1 %v943_v10 }
  0x21   : > { %861 = vmatpush3.bf16.msra.mxu0 %v944_v13  ;;  %921 = vmatpush3.bf16.msra.mxu1 %v944_v13 }
  0x22   : > { %862 = vmatprep.subr.bf16.mxu0 %v945_v14  ;;  %914 = vmatprep.subr.bf16.mxu1 %v945_v14 }
  0x25   : > { %863 = vmatpush3.bf16.msra.mxu0 %v946_v15  ;;  %922 = vmatpush3.bf16.msra.mxu1 %v946_v15 }
  0x26   : > { %864 = vmatprep.subr.bf16.mxu0 %v947_v16  ;;  %915 = vmatprep.subr.bf16.mxu1 %v947_v16 }
  0x29   : > { %865 = vmatpush3.bf16.msra.mxu0 %v948_v17  ;;  %923 = vmatpush3.bf16.msra.mxu1 %v948_v17 }
  0x2a   : > { %896 = vmatprep.subr.bf16.mxu1 %v955_v18 }
  0x2c   : > { %505 = vmatmul.mubr.bf16.vlgmr.msra.gmra.mxu0 %v949_v19  ;;  %529 = vmatmul.mubr.bf16.vlgmr.msra.gmra.mxu1 %v952_v20 }
  0x2d   : > { %897 = vmatpush3.bf16.msra.mxu1 %v955_v18  ;;  %512 = vmatprep.mubr.bf16.mxu0 %v957_v21 }
  0x2e   : > { %898 = vmatprep.subr.bf16.mxu1 %v956_v22  ;;  %900 = vmatprep.mubr.msk.bf16.mxu1 %vm459_vm0, %v959_v23 }
  0x31   : > { %899 = vmatpush3.bf16.msra.mxu1 %v956_v22 }
  0x34   : > { %513 = vmatmul.mubr.bf16.gmra.mxu0 %v960_v24  ;;  %901 = vmatmul.mubr.msk.bf16.vlgmr.msra.gmra.mxu1 %vm459_vm0, %v961_v25 }
  0x35   : > { %520 = vmatprep.mubr.bf16.mxu0 %v962_v26  ;;  %904 = vmatprep.mubr.msk.bf16.mxu1 %vm459_vm0, %v964_v27 }
  0x3c   : > { %521 = vmatmul.mubr.bf16.gmra.mxu0 %v965_v28  ;;  %905 = vmatmul.mubr.msk.bf16.gmra.mxu1 %vm459_vm0, %v966_v29 }
  0xec   : > { %v866_v30 = vpop.f32.mrf.mxu0  ;;  %v884_v31 = vpop.f32.mrf.mxu1 }
  0xee   : > { %v867_v32 = vpop.f32.mrf.mxu0  ;;  %v885_v33 = vpop.f32.mrf.mxu1 }
  0xef   : > { %v868_v36 = vadd.f32 %v867_v32, %v866_v30  ;;  %v886_v1 = vadd.f32 %v885_v33, %v884_v31 }
  0xf0   : > { %v869_v34 = vpop.f32.mrf.mxu0  ;;  %v887_v35 = vpop.f32.mrf.mxu1 }
  0xf1   : > { %v507_v43 = vadd.f32 %v868_v36, %v811_v39  ;;  %v531_v10 = vadd.f32 %v886_v1, %v811_v39 }
  0xf2   : > { %v870_v37 = vpop.f32.mrf.mxu0  ;;  %v888_v38 = vpop.f32.mrf.mxu1 }
  0xf3   : > { %v871_v42 = vadd.f32 %v870_v37, %v869_v34  ;;  %v889_v9 = vadd.f32 %v888_v38, %v887_v35 }
  0xf4   : > { %v872_v40 = vpop.f32.mrf.mxu0  ;;  %v902_v41 = vpop.f32.mrf.mxu1 }
  0xf5   : > { %v510_v51 = vadd.f32 %v871_v42, %v811_v39  ;;  %v534_v17 = vadd.f32 %v889_v9, %v811_v39 }
  0xf6   : > { %v873_v44 = vpop.f32.mrf.mxu0  ;;  %v571_v45 = vpop.f32.mrf.mxu1 }
  0xf7   : > { %v874_v46 = vadd.f32 %v873_v44, %v872_v40  ;;  %v572_v47 = vadd.f32 %v571_v45, %v507_v43 }
  0xf8   : > { %v875_v48 = vpop.f32.mrf.mxu0  ;;  %v903_v49 = vpop.f32.mrf.mxu1 }
  0xf9   : > { %v515_v50 = vadd.f32 %v874_v46, %v811_v39  ;;  %v603_v52 = vsel %vm602_vm1, %v572_v47, 0.0 }
  0xfa   : > { %v876_v53 = vpop.f32.mrf.mxu0  ;;  %v574_v54 = vpop.f32.mrf.mxu1  ;;  %604 = vadd.xlane.f32.xlu0 %v603_v52 }
  0xfb   : > { %v877_v55 = vadd.f32 %v876_v53, %v875_v48  ;;  %v575_v56 = vadd.f32 %v574_v54, %v510_v51  ;;  %v580_v57 = vadd.f32 %v902_v41, %v515_v50 }
  0xfc   : > { %v878_v58 = vpop.f32.mrf.mxu0  ;;  %v906_v59 = vpop.f32.mrf.mxu1 }
  0xfd   : > { %v518_v60 = vadd.f32 %v877_v55, %v811_v39  ;;  %v609_v61 = vsel %vm602_vm1, %v580_v57, 0.0  ;;  %v606_v62 = vsel %vm602_vm1, %v575_v56, 0.0  ;;  %v596_v13 = vadd.f32 %v906_v59, %v531_v10 }
  0xfe   : > { %v879_v63 = vpop.f32.mrf.mxu0  ;;  %v587_v0 = vpop.f32.mrf.mxu1  ;;  %610 = vadd.xlane.f32.xlu1 %v609_v61  ;;  %607 = vadd.xlane.f32.xlu0 %v606_v62 }
  0xff   : > { %v880_v2 = vadd.f32 %v879_v63, %v878_v58  ;;  %v583_v3 = vadd.f32 %v903_v49, %v518_v60  ;;  %v621_v21 = vsel %vm602_vm1, %v596_v13, 0.0 }
 0x100   : > { %v881_v4 = vpop.f32.mrf.mxu0  ;;  %v907_v7 = vpop.f32.mrf.mxu1 }
 0x101   : > { %v523_v5 = vadd.f32 %v880_v2, %v811_v39  ;;  %v612_v6 = vsel %vm602_vm1, %v583_v3, 0.0  ;;  %v599_v19 = vadd.f32 %v907_v7, %v534_v17 }
 0x102   : > { %v882_v8 = vpop.f32.mrf.mxu0  ;;  %613 = vadd.xlane.f32.xlu1 %v612_v6  ;;  %v590_v16 = vpop.f32.mrf.mxu1 }
 0x103   : > { %v588_v11 = vadd.f32 %v587_v0, %v523_v5  ;;  %v883_v12 = vadd.f32 %v882_v8, %v881_v4  ;;  %v624_v22 = vsel %vm602_vm1, %v599_v19, 0.0 }
 0x105   : > { %v526_v14 = vadd.f32 %v883_v12, %v811_v39  ;;  %v615_v15 = vsel %vm602_vm1, %v588_v11, 0.0 }
 0x106   : > { %616 = vadd.xlane.f32.xlu0 %v615_v15 }
 0x107   : > { %v591_v18 = vadd.f32 %v590_v16, %v526_v14 }
 0x109   : > { %v618_v20 = vsel %vm602_vm1, %v591_v18, 0.0 }
 0x10a   : > { %619 = vadd.xlane.f32.xlu1 %v618_v20  ;;  %622 = vadd.xlane.f32.xlu0 %v621_v21 }
 0x10e   : > { %625 = vadd.xlane.f32.xlu1 %v624_v22 }
 0x183   : > { %v605_v23 = vpop.xlane.xlu0 %604 }
 0x184   : > { %v628_v24 = vmul.f32 0.015625, %v605_v23  ;;  %v847_v23 = vld [vmem:[%s1201_s4] ss:$0 sm:$0xff] }
 0x186   : > { %v1118_v25 = vsub.f32 %v572_v47, %v628_v24 }
 0x187   : > { %v611_v26 = vpop.xlane.xlu1 %610  ;;  %v608_v27 = vpop.xlane.xlu0 %607 }
 0x188   : > { %v630_v28 = vmul.f32 0.015625, %v611_v26  ;;  %v629_v29 = vmul.f32 0.015625, %v608_v27  ;;  %v644_v30 = vmul.f32 %v1118_v25, %v1118_v25 }
 0x18a   : > { %v1122_v31 = vsub.f32 %v580_v57, %v630_v28  ;;  %v1124_v32 = vsub.f32 %v575_v56, %v629_v29  ;;  %v652_v33 = vsel %vm602_vm1, %v644_v30, 0.0 }
 0x18b   : > { %v614_v34 = vpop.xlane.xlu1 %613  ;;  %653 = vadd.xlane.f32.xlu0 %v652_v33 }
 0x18c   : > { %v631_v35 = vmul.f32 0.015625, %v614_v34  ;;  %v646_v36 = vmul.f32 %v1122_v31, %v1122_v31  ;;  %v645_v37 = vmul.f32 %v1124_v32, %v1124_v32 }
 0x18e   : > { %v1131_v38 = vsub.f32 %v583_v3, %v631_v35  ;;  %v658_v39 = vsel %vm602_vm1, %v646_v36, 0.0  ;;  %v655_v40 = vsel %vm602_vm1, %v645_v37, 0.0 }
 0x18f   : > { %659 = vadd.xlane.f32.xlu0 %v658_v39  ;;  %656 = vadd.xlane.f32.xlu1 %v655_v40  ;;  %v617_v41 = vpop.xlane.xlu0 %616 }
 0x190   : > { %v632_v42 = vmul.f32 0.015625, %v617_v41  ;;  %v647_v43 = vmul.f32 %v1131_v38, %v1131_v38 }
 0x192   : > { %v1137_v44 = vsub.f32 %v588_v11, %v632_v42  ;;  %v661_v45 = vsel %vm602_vm1, %v647_v43, 0.0 }
 0x193   : > { %v620_v46 = vpop.xlane.xlu1 %619  ;;  %662 = vadd.xlane.f32.xlu1 %v661_v45  ;;  %v623_v47 = vpop.xlane.xlu0 %622 }
 0x194   : > { %v633_v48 = vmul.f32 0.015625, %v620_v46  ;;  %v634_v49 = vmul.f32 0.015625, %v623_v47  ;;  %v648_v50 = vmul.f32 %v1137_v44, %v1137_v44 }
 0x196   : > { %v1142_v51 = vsub.f32 %v591_v18, %v633_v48  ;;  %v1144_v52 = vsub.f32 %v596_v13, %v634_v49  ;;  %v664_v53 = vsel %vm602_vm1, %v648_v50, 0.0 }
 0x197   : > { %v626_v54 = vpop.xlane.xlu1 %625  ;;  %665 = vadd.xlane.f32.xlu0 %v664_v53 }
 0x198   : > { %v635_v55 = vmul.f32 0.015625, %v626_v54  ;;  %v649_v56 = vmul.f32 %v1142_v51, %v1142_v51  ;;  %v650_v57 = vmul.f32 %v1144_v52, %v1144_v52 }
 0x19a   : > { %v1151_v58 = vsub.f32 %v599_v19, %v635_v55  ;;  %v667_v59 = vsel %vm602_vm1, %v649_v56, 0.0  ;;  %v670_v60 = vsel %vm602_vm1, %v650_v57, 0.0  ;;  %v846_v19 = vld [vmem:[%s1200_s3] ss:$0 sm:$0xff] }
 0x19b   : > { %668 = vadd.xlane.f32.xlu1 %v667_v59  ;;  %671 = vadd.xlane.f32.xlu0 %v670_v60 }
 0x19c   : > { %v651_v61 = vmul.f32 %v1151_v58, %v1151_v58 }
 0x19e   : > { %v673_v62 = vsel %vm602_vm1, %v651_v61, 0.0 }
 0x19f   : > { %674 = vadd.xlane.f32.xlu1 %v673_v62 }
 0x214   : > { %v654_v63 = vpop.xlane.xlu0 %653 }
 0x215   : > { %v676_v0 = vmul.f32 0.015625, %v654_v63 }
 0x217   : > { %v684_v1 = vadd.f32 1e-05, %v676_v0 }
 0x218   : > { %v657_v2 = vpop.xlane.xlu1 %656  ;;  %v660_v3 = vpop.xlane.xlu0 %659 }
 0x219   : > { %967 = vrsqrt.f32 %v684_v1  ;;  %v677_v4 = vmul.f32 0.015625, %v657_v2  ;;  %v678_v5 = vmul.f32 0.015625, %v660_v3 }
 0x21b   : > { %v685_v6 = vadd.f32 1e-05, %v677_v4  ;;  %v686_v7 = vadd.f32 1e-05, %v678_v5 }
 0x21c   : > { %v663_v8 = vpop.xlane.xlu1 %662 }
 0x21d   : > { %969 = vrsqrt.f32 %v685_v6  ;;  %v679_v9 = vmul.f32 0.015625, %v663_v8 }
 0x21e   : > { %971 = vrsqrt.f32 %v686_v7 }
 0x21f   : > { %v687_v10 = vadd.f32 1e-05, %v679_v9 }
 0x220   : > { %v666_v11 = vpop.xlane.xlu0 %665 }
 0x221   : > { %973 = vrsqrt.f32 %v687_v10  ;;  %v680_v12 = vmul.f32 0.015625, %v666_v11 }
 0x223   : > { %v688_v13 = vadd.f32 1e-05, %v680_v12 }
 0x224   : > { %v669_v14 = vpop.xlane.xlu1 %668  ;;  %v672_v15 = vpop.xlane.xlu0 %671 }
 0x225   : > { %975 = vrsqrt.f32 %v688_v13  ;;  %v681_v16 = vmul.f32 0.015625, %v669_v14  ;;  %v682_v17 = vmul.f32 0.015625, %v672_v15 }
 0x226   : > { %v968_v18 = vpop.eup %967 }
 0x227   : > { %v700_v20 = vmul.f32 %v968_v18, %v1118_v25  ;;  %v689_v21 = vadd.f32 1e-05, %v681_v16  ;;  %v690_v22 = vadd.f32 1e-05, %v682_v17 }
 0x228   : > { %v675_v24 = vpop.xlane.xlu1 %674 }
 0x229   : > { %v715_v26 = vmul.f32 %v846_v19, %v700_v20  ;;  %977 = vrsqrt.f32 %v689_v21  ;;  %v683_v27 = vmul.f32 0.015625, %v675_v24 }
 0x22a   : > { %v970_v28 = vpop.eup %969  ;;  %979 = vrsqrt.f32 %v690_v22 }
 0x22b   : > { %v972_v25 = vpop.eup %971  ;;  %v730_v29 = vadd.f32 %v847_v23, %v715_v26  ;;  %v701_v30 = vmul.f32 %v970_v28, %v1124_v32  ;;  %v691_v33 = vadd.f32 1e-05, %v683_v27 }
 0x22c   : > { %v702_v34 = vmul.f32 %v972_v25, %v1122_v31 }
 0x22d   : > { %738 = vst.msk [vmem:[%s1169_s24] sm:$0xff] %vm602_vm1, %v730_v29  ;;  %v716_v35 = vmul.f32 %v846_v19, %v701_v30  ;;  %981 = vrsqrt.f32 %v691_v33 }
 0x22e   : > { %v974_v36 = vpop.eup %973  ;;  %v717_v37 = vmul.f32 %v846_v19, %v702_v34 }
 0x22f   : > { %v731_v39 = vadd.f32 %v847_v23, %v716_v35  ;;  %v703_v40 = vmul.f32 %v974_v36, %v1131_v38 }
 0x230   : > { %v732_v41 = vadd.f32 %v847_v23, %v717_v37 }
 0x231   : > { %739 = vst.msk [vmem:[%s1169_s24 + $0x8] sm:$0xff] %vm602_vm1, %v731_v39  ;;  %v718_v42 = vmul.f32 %v846_v19, %v703_v40 }
 0x232   : > { %v976_v43 = vpop.eup %975  ;;  %740 = vst.msk [vmem:[%s1169_s24 + $0x10] sm:$0xff] %vm602_vm1, %v732_v41 }
 0x233   : > { %v733_v32 = vadd.f32 %v847_v23, %v718_v42  ;;  %v704_v31 = vmul.f32 %v976_v43, %v1137_v44 }
 0x235   : > { %741 = vst.msk [vmem:[%s1169_s24 + $0x18] sm:$0xff] %vm602_vm1, %v733_v32  ;;  %v719_v45 = vmul.f32 %v846_v19, %v704_v31 }
 0x236   : > { %v978_v46 = vpop.eup %977 }
 0x237   : > { %v980_v47 = vpop.eup %979  ;;  %v734_v48 = vadd.f32 %v847_v23, %v719_v45  ;;  %v705_v38 = vmul.f32 %v978_v46, %v1142_v51 }
 0x238   : > { %v706_v49 = vmul.f32 %v980_v47, %v1144_v52 }
 0x239   : > { %742 = vst.msk [vmem:[%s1169_s24 + $0x20] sm:$0xff] %vm602_vm1, %v734_v48  ;;  %v720_v50 = vmul.f32 %v846_v19, %v705_v38 }
 0x23a   : > { %v982_v53 = vpop.eup %981  ;;  %v721_v54 = vmul.f32 %v846_v19, %v706_v49 }
 0x23b   : > { %v735_v55 = vadd.f32 %v847_v23, %v720_v50  ;;  %v707_v44 = vmul.f32 %v982_v53, %v1151_v58 }
 0x23c   : > { %v736_v56 = vadd.f32 %v847_v23, %v721_v54 }
 0x23d   : > { %743 = vst.msk [vmem:[%s1169_s24 + $0x28] sm:$0xff] %vm602_vm1, %v735_v55  ;;  %v722_v57 = vmul.f32 %v846_v19, %v707_v44 }
 0x23e   : > { %744 = vst.msk [vmem:[%s1169_s24 + $0x30] sm:$0xff] %vm602_vm1, %v736_v56 }
 0x23f   : > { %v737_v59 = vadd.f32 %v847_v23, %v722_v57 }
 0x241   : > { %745 = vst.msk [vmem:[%s1169_s24 + $0x38] sm:$0xff] %vm602_vm1, %v737_v59 }
 0x242 PF: > { %s15_s18 = sadd.s32 1, %s989_s18  }
 0x243   : > { %p12_p4 = scmp.ge.s32.totalorder %s15_s18, 4  }
 0x245   :  { %14 = sbr.rel (!%p12_p4) target bundleno = 1 (0x1), region = 70 }

</bundles_post_ra>
